<compile_context>
chip_gen: v7x
topology: tpu7x:2x2x1
jax: 0.10.0
libtpu: 0.0.40
codegen_flags: <defaults>
</compile_context>

<pallas_src>
import numpy as np
import jax
import jax.numpy as jnp
from jax import lax
from jax.experimental import pallas as pl
from jax.experimental.pallas import tpu as pltpu

K = 5        # kernel_size
PAD = 4      # padding
STRIDE = 1   # stride
C_IN = 3     # Conv2d(3, 3, groups=3) -> depthwise, identical kernel per channel


def gaussian_weights_1d(kernel_size: int = K) -> np.ndarray:
    """1-D factor g1 such that outer(g1, g1) == the module's normalized 5x5 kernel."""
    mean = (kernel_size - 1) / 2.0
    variance = (kernel_size / 6.0) ** 2.0
    coords = np.arange(kernel_size, dtype=np.float64)
    v = np.exp(-((coords - mean) ** 2) / (2.0 * variance))
    return v / v.sum()


def gaussian_weights_2d(kernel_size: int = K) -> np.ndarray:
    """Exactly reproduces the PyTorch __init__ weight construction."""
    mean = (kernel_size - 1) / 2.0
    variance = (kernel_size / 6.0) ** 2.0
    coords = np.arange(kernel_size, dtype=np.float32)
    x_grid = np.tile(coords, kernel_size).reshape(kernel_size, kernel_size)
    y_grid = x_grid.T          # `.y_quantization()` interpreted as transpose (.t())
    g = np.exp(-(((x_grid - mean) ** 2 + (y_grid - mean) ** 2) / (2.0 * variance)))
    return (g / g.sum()).astype(np.float32)


def _vmem_capacity_bytes() -> int:
    """Generation-aware VMEM size; conservative fallback if the query fails."""
    try:
        return int(pltpu.get_tpu_info().vmem_capacity_bytes)
    except Exception:
        return 64 * 1024 * 1024   # v7x per-TensorCore physical VMEM


def _plane_footprint_bytes(h: int, w: int) -> int:
    """Per-plane f32 VMEM: double-buffered in/out blocks + padded scratch."""
    ho, wo = h + 2 * PAD - K + 1, w + 2 * PAD - K + 1      # = h+4, w+4
    hx, wx = h + 16, w + 2 * PAD
    return 4 * (2 * h * w + 2 * ho * wo + hx * wx)


def _choose_plane_block(nc: int, h: int, w: int, vmem_budget: float) -> int:
    """Largest divisor of nc that fits the VMEM budget while leaving >=4 grid
    steps (pipeline steady state; load balance across v7x's two TensorCores)."""
    per_plane = _plane_footprint_bytes(h, w)
    p_vmem = max(1, int(vmem_budget) // per_plane)
    p_steps = max(1, nc // 4)
    p_cap = min(p_vmem, p_steps)
    best = 1
    for p in range(1, nc + 1):
        if nc % p == 0 and p <= p_cap:
            best = p
    return best


def _make_kernel(p: int, h: int, w: int):
    ho, wo = h + PAD, w + PAD          # output spatial dims (H+4, W+4)
    wx = w + 2 * PAD                   # lane-padded scratch width
    wts = tuple(float(v) for v in gaussian_weights_1d(K))   # baked-in immediates

    # Fused-pass row-strip height: keep the ~3 live strip-sized f32 values
    # within roughly 36 of the 64 vregs.  Multiple of 8 (sublane tile).
    tiles_w = -(-wx // 128)
    rs = 8 * max(1, 12 // (p * tiles_w))

    def kernel(x_ref, o_ref, xp_ref):
        f32 = jnp.float32

        # ---- halo-only zeroing (top/bottom 8-row bands + 4-lane side columns)
        xp_ref[:, 0:8, :] = jnp.zeros((p, 8, wx), f32)
        xp_ref[:, h + 8:h + 16, :] = jnp.zeros((p, 8, wx), f32)
        xp_ref[:, 8:h + 8, 0:PAD] = jnp.zeros((p, h, PAD), f32)
        xp_ref[:, 8:h + 8, w + PAD:wx] = jnp.zeros((p, h, PAD), f32)

        # ---- place the input at sublane offset 8 (tile aligned), lane offset 4.
        # Padded-image row r' lives at scratch row r' + 4; columns match xpad.
        # TODO(synk): DMA the HBM block straight into this window
        # (memory_space=pl.ANY + pltpu.make_async_copy) to take this copy off
        # the vld/vst slots entirely.
        xp_ref[:, 8:8 + h, PAD:PAD + w] = x_ref[...].astype(f32)

        def compute_strip(r0, nrows):
            # vertical 5-tap (sublane shifts) over the lane-padded width,
            # two accumulators to break the serial VALU chain.
            tap = lambda a: xp_ref[:, pl.ds(r0 + a + 4, nrows), :]
            v0 = wts[0] * tap(0)
            v1 = wts[1] * tap(1)
            v0 = v0 + wts[2] * tap(2)
            v1 = v1 + wts[3] * tap(3)
            v0 = v0 + wts[4] * tap(4)
            v = v0 + v1                          # (p, nrows, wx), stays in vregs
            # horizontal 5-tap (lane shifts), fused — no intermediate scratch.
            h0 = wts[0] * v[:, :, 0:wo]
            h1 = wts[1] * v[:, :, 1:1 + wo]
            h0 = h0 + wts[2] * v[:, :, 2:2 + wo]
            h1 = h1 + wts[3] * v[:, :, 3:3 + wo]
            h0 = h0 + wts[4] * v[:, :, 4:4 + wo]
            o_ref[:, pl.ds(r0, nrows), :] = (h0 + h1).astype(o_ref.dtype)

        if ho <= rs:
            compute_strip(0, ho)
        else:
            n_full, tail = divmod(ho, rs)
            if n_full <= 4:
                for s in range(n_full):
                    compute_strip(s * rs, rs)
            else:
                def body(s, carry):
                    compute_strip(pl.multiple_of(s * rs, 8), rs)
                    return carry
                lax.fori_loop(0, n_full, body, 0)
            if tail:
                compute_strip(n_full * rs, tail)

    return kernel, ho, wo


def _gaussian_filter_impl(x: jnp.ndarray) -> jnp.ndarray:
    """x: (N, 3, H, W) -> (N, 3, H+4, W+4). Same semantics as the PyTorch module."""
    n, c, h, w = x.shape
    nc = n * c

    cap = _vmem_capacity_bytes()
    per_plane = _plane_footprint_bytes(h, w)
    if per_plane + (8 << 20) > 0.9 * cap:
        # TODO(synk): grid-level H-strip tiling (4-row halo windows) for planes
        # that do not fit VMEM as a whole (mandatory on v7x beyond ~1.5k^2 f32).
        raise NotImplementedError(
            f"a single ({h}x{w}) plane set needs ~{per_plane / 2**20:.1f} MiB of "
            "VMEM per grid step; H-strip tiling is required for planes this large")

    p = _choose_plane_block(nc, h, w, vmem_budget=0.4 * cap)
    kernel, ho, wo = _make_kernel(p, h, w)

    footprint = p * per_plane
    vmem_limit = int(min(0.85 * cap, 96 * 1024 * 1024))
    vmem_limit = max(vmem_limit, footprint + (8 << 20))
    vmem_limit = int(min(vmem_limit, 0.9 * cap))

    # Free reshape (no transpose, no HBM pad pass).
    x_flat = x.reshape(nc, h, w)

    # TODO(synk): for production shapes with W < 128, re-layout to pack several
    # padded rows along the lane axis (lane-dense output blocks); tiny W leaves
    # every output store a masked partial vst.
    out_flat = pl.pallas_call(
        kernel,
        out_shape=jax.ShapeDtypeStruct((nc, ho, wo), x.dtype),
        grid=(nc // p,),
        in_specs=[pl.BlockSpec((p, h, w), lambda i: (i, 0, 0))],
        out_specs=pl.BlockSpec((p, ho, wo), lambda i: (i, 0, 0)),
        scratch_shapes=[
            pltpu.VMEM((p, h + 16, w + 2 * PAD), jnp.float32),  # padded planes
        ],
        compiler_params=pltpu.CompilerParams(
            dimension_semantics=("parallel",),
            vmem_limit_bytes=vmem_limit),
    )(x_flat)

    return out_flat.reshape(n, c, ho, wo)


gaussian_filter = jax.jit(_gaussian_filter_impl)


def _reference(x: jnp.ndarray) -> jnp.ndarray:
    """Pure-JAX reference: grouped (depthwise) conv with the module's 2-D weights."""
    w2d = jnp.asarray(gaussian_weights_2d(K))
    w_full = jnp.broadcast_to(w2d[None, None, :, :], (C_IN, 1, K, K))
    return jax.lax.conv_general_dilated(
        x, w_full,
        window_strides=(STRIDE, STRIDE),
        padding=((PAD, PAD), (PAD, PAD)),
        dimension_numbers=("NCHW", "OIHW", "NCHW"),
        feature_group_count=C_IN,
    )


if __name__ == "__main__":
    key0, key1, key2 = jax.random.split(jax.random.PRNGKey(0), 3)

    # Channels are fixed at 3 by the module (Conv2d(3, 3, groups=3)).
    x1 = jax.random.normal(key0, (2, C_IN, 16, 16), dtype=jnp.float32)
    o1 = gaussian_filter(x1)
    jax.block_until_ready(o1)
    assert o1.shape == (2, C_IN, 20, 20)
    assert jnp.allclose(o1, _reference(x1), atol=1e-5, rtol=1e-5)

    # Multi-plane blocks (p=3), static multi-strip path, non-multiple-of-8 dims.
    x2 = jax.random.normal(key1, (4, C_IN, 40, 52), dtype=jnp.float32)
    o2 = gaussian_filter(x2)
    jax.block_until_ready(o2)
    assert o2.shape == (4, C_IN, 44, 56)
    assert jnp.allclose(o2, _reference(x2), atol=1e-5, rtol=1e-5)

    # Larger plane: exercises the fori_loop strip path + tail strip, and a
    # padded width that spans two lane tiles.
    x3 = jax.random.normal(key2, (1, C_IN, 400, 128), dtype=jnp.float32)
    o3 = gaussian_filter(x3)
    jax.block_until_ready(o3)
    assert o3.shape == (1, C_IN, 404, 132)
    assert jnp.allclose(o3, _reference(x3), atol=1e-5, rtol=1e-5)

    print("KERNEL_OK")
</pallas_src>

<mosaic_0001>
module attributes {stable_mosaic.version = 11 : i64} {
  func.func @kernel(%arg0: i32, %arg1: memref<1x16x16xf32, #tpu.memory_space<vmem>>, %arg2: memref<1x20x20xf32, #tpu.memory_space<vmem>>, %arg3: memref<1x32x24xf32, #tpu.memory_space<vmem>>) attributes {dimension_semantics = [#tpu.dimension_semantics<parallel>], iteration_bounds = array<i64: 6>, scalar_prefetch = 0 : i64, scratch_operands = 1 : i64, tpu.core_type = #tpu.core_type<tc>, window_params = [{transform_indices = @transform_0, window_bounds = array<i64: 1, 16, 16>}, {transform_indices = @transform_1, window_bounds = array<i64: 1, 20, 20>}]} {
    %cst = arith.constant 0.000000e+00 : f32
    %0 = vector.broadcast %cst : f32 to vector<1x8x24xf32>
    %c0 = arith.constant 0 : index
    %c0_0 = arith.constant 0 : index
    %c0_1 = arith.constant 0 : index
    %1 = vector.load %arg3[%c0, %c0_0, %c0_1] : memref<1x32x24xf32, #tpu.memory_space<vmem>>, vector<1x8x24xf32>
    tpu.vector_store %arg3[%c0, %c0_0, %c0_1], %0 {strides = array<i32>} : memref<1x32x24xf32, #tpu.memory_space<vmem>>, vector<1x8x24xf32>,
    %cst_2 = arith.constant 0.000000e+00 : f32
    %2 = vector.broadcast %cst_2 : f32 to vector<1x8x24xf32>
    %c0_3 = arith.constant 0 : index
    %c24 = arith.constant 24 : index
    %c0_4 = arith.constant 0 : index
    %3 = vector.load %arg3[%c0_3, %c24, %c0_4] : memref<1x32x24xf32, #tpu.memory_space<vmem>>, vector<1x8x24xf32>
    tpu.vector_store %arg3[%c0_3, %c24, %c0_4], %2 {strides = array<i32>} : memref<1x32x24xf32, #tpu.memory_space<vmem>>, vector<1x8x24xf32>,
    %cst_5 = arith.constant 0.000000e+00 : f32
    %4 = vector.broadcast %cst_5 : f32 to vector<1x16x4xf32>
    %c0_6 = arith.constant 0 : index
    %c8 = arith.constant 8 : index
    %c0_7 = arith.constant 0 : index
    %5 = vector.load %arg3[%c0_6, %c8, %c0_7] : memref<1x32x24xf32, #tpu.memory_space<vmem>>, vector<1x16x4xf32>
    tpu.vector_store %arg3[%c0_6, %c8, %c0_7], %4 {strides = array<i32>} : memref<1x32x24xf32, #tpu.memory_space<vmem>>, vector<1x16x4xf32>,
    %cst_8 = arith.constant 0.000000e+00 : f32
    %6 = vector.broadcast %cst_8 : f32 to vector<1x16x4xf32>
    %c0_9 = arith.constant 0 : index
    %c8_10 = arith.constant 8 : index
    %c20 = arith.constant 20 : index
    %7 = vector.load %arg3[%c0_9, %c8_10, %c20] : memref<1x32x24xf32, #tpu.memory_space<vmem>>, vector<1x16x4xf32>
    tpu.vector_store %arg3[%c0_9, %c8_10, %c20], %6 {strides = array<i32>} : memref<1x32x24xf32, #tpu.memory_space<vmem>>, vector<1x16x4xf32>,
    %c0_11 = arith.constant 0 : index
    %c0_12 = arith.constant 0 : index
    %c0_13 = arith.constant 0 : index
    %8 = vector.load %arg1[%c0_11, %c0_12, %c0_13] : memref<1x16x16xf32, #tpu.memory_space<vmem>>, vector<1x16x16xf32>
    %c0_14 = arith.constant 0 : index
    %c8_15 = arith.constant 8 : index
    %c4 = arith.constant 4 : index
    %9 = vector.load %arg3[%c0_14, %c8_15, %c4] : memref<1x32x24xf32, #tpu.memory_space<vmem>>, vector<1x16x16xf32>
    tpu.vector_store %arg3[%c0_14, %c8_15, %c4], %8 {strides = array<i32>} : memref<1x32x24xf32, #tpu.memory_space<vmem>>, vector<1x16x16xf32>,
    %c0_16 = arith.constant 0 : index
    %c4_17 = arith.constant 4 : index
    %c0_18 = arith.constant 0 : index
    %10 = vector.load %arg3[%c0_16, %c4_17, %c0_18] : memref<1x32x24xf32, #tpu.memory_space<vmem>>, vector<1x20x24xf32>
    %cst_19 = arith.constant 0.0269131567 : f32
    %11 = vector.broadcast %cst_19 : f32 to vector<1x20x24xf32>
    %12 = arith.mulf %11, %10 : vector<1x20x24xf32>
    %c0_20 = arith.constant 0 : index
    %c5 = arith.constant 5 : index
    %c0_21 = arith.constant 0 : index
    %13 = vector.load %arg3[%c0_20, %c5, %c0_21] : memref<1x32x24xf32, #tpu.memory_space<vmem>>, vector<1x20x24xf32>
    %cst_22 = arith.constant 0.233367682 : f32
    %14 = vector.broadcast %cst_22 : f32 to vector<1x20x24xf32>
    %15 = arith.mulf %14, %13 : vector<1x20x24xf32>
    %c0_23 = arith.constant 0 : index
    %c6 = arith.constant 6 : index
    %c0_24 = arith.constant 0 : index
    %16 = vector.load %arg3[%c0_23, %c6, %c0_24] : memref<1x32x24xf32, #tpu.memory_space<vmem>>, vector<1x20x24xf32>
    %cst_25 = arith.constant 0.479438305 : f32
    %17 = vector.broadcast %cst_25 : f32 to vector<1x20x24xf32>
    %18 = arith.mulf %17, %16 : vector<1x20x24xf32>
    %19 = arith.addf %12, %18 : vector<1x20x24xf32>
    %c0_26 = arith.constant 0 : index
    %c7 = arith.constant 7 : index
    %c0_27 = arith.constant 0 : index
    %20 = vector.load %arg3[%c0_26, %c7, %c0_27] : memref<1x32x24xf32, #tpu.memory_space<vmem>>, vector<1x20x24xf32>
    %cst_28 = arith.constant 0.233367682 : f32
    %21 = vector.broadcast %cst_28 : f32 to vector<1x20x24xf32>
    %22 = arith.mulf %21, %20 : vector<1x20x24xf32>
    %23 = arith.addf %15, %22 : vector<1x20x24xf32>
    %c0_29 = arith.constant 0 : index
    %c8_30 = arith.constant 8 : index
    %c0_31 = arith.constant 0 : index
    %24 = vector.load %arg3[%c0_29, %c8_30, %c0_31] : memref<1x32x24xf32, #tpu.memory_space<vmem>>, vector<1x20x24xf32>
    %cst_32 = arith.constant 0.0269131567 : f32
    %25 = vector.broadcast %cst_32 : f32 to vector<1x20x24xf32>
    %26 = arith.mulf %25, %24 : vector<1x20x24xf32>
    %27 = arith.addf %19, %26 : vector<1x20x24xf32>
    %28 = arith.addf %27, %23 : vector<1x20x24xf32>
    %29 = vector.extract_strided_slice %28 {offsets = [0, 0, 0], sizes = [1, 20, 20], strides = [1, 1, 1]} : vector<1x20x24xf32> to vector<1x20x20xf32>
    %cst_33 = arith.constant 0.0269131567 : f32
    %30 = vector.broadcast %cst_33 : f32 to vector<1x20x20xf32>
    %31 = arith.mulf %30, %29 : vector<1x20x20xf32>
    %32 = vector.extract_strided_slice %28 {offsets = [0, 0, 1], sizes = [1, 20, 20], strides = [1, 1, 1]} : vector<1x20x24xf32> to vector<1x20x20xf32>
    %cst_34 = arith.constant 0.233367682 : f32
    %33 = vector.broadcast %cst_34 : f32 to vector<1x20x20xf32>
    %34 = arith.mulf %33, %32 : vector<1x20x20xf32>
    %35 = vector.extract_strided_slice %28 {offsets = [0, 0, 2], sizes = [1, 20, 20], strides = [1, 1, 1]} : vector<1x20x24xf32> to vector<1x20x20xf32>
    %cst_35 = arith.constant 0.479438305 : f32
    %36 = vector.broadcast %cst_35 : f32 to vector<1x20x20xf32>
    %37 = arith.mulf %36, %35 : vector<1x20x20xf32>
    %38 = arith.addf %31, %37 : vector<1x20x20xf32>
    %39 = vector.extract_strided_slice %28 {offsets = [0, 0, 3], sizes = [1, 20, 20], strides = [1, 1, 1]} : vector<1x20x24xf32> to vector<1x20x20xf32>
    %cst_36 = arith.constant 0.233367682 : f32
    %40 = vector.broadcast %cst_36 : f32 to vector<1x20x20xf32>
    %41 = arith.mulf %40, %39 : vector<1x20x20xf32>
    %42 = arith.addf %34, %41 : vector<1x20x20xf32>
    %43 = vector.extract_strided_slice %28 {offsets = [0, 0, 4], sizes = [1, 20, 20], strides = [1, 1, 1]} : vector<1x20x24xf32> to vector<1x20x20xf32>
    %cst_37 = arith.constant 0.0269131567 : f32
    %44 = vector.broadcast %cst_37 : f32 to vector<1x20x20xf32>
    %45 = arith.mulf %44, %43 : vector<1x20x20xf32>
    %46 = arith.addf %38, %45 : vector<1x20x20xf32>
    %47 = arith.addf %46, %42 : vector<1x20x20xf32>
    %c0_38 = arith.constant 0 : index
    %c0_39 = arith.constant 0 : index
    %c0_40 = arith.constant 0 : index
    %48 = vector.load %arg2[%c0_38, %c0_39, %c0_40] : memref<1x20x20xf32, #tpu.memory_space<vmem>>, vector<1x20x20xf32>
    tpu.vector_store %arg2[%c0_38, %c0_39, %c0_40], %47 {strides = array<i32>} : memref<1x20x20xf32, #tpu.memory_space<vmem>>, vector<1x20x20xf32>,
    return
  }
  func.func @transform_0(%arg0: i32) -> (i32, i32, i32) {
    %c0_i32 = arith.constant 0 : i32
    %c0_i32_0 = arith.constant 0 : i32
    %c0_i32_1 = arith.constant 0 : i32
    return %arg0, %c0_i32, %c0_i32_0 : i32, i32, i32
  }
  func.func @transform_1(%arg0: i32) -> (i32, i32, i32) {
    %c0_i32 = arith.constant 0 : i32
    %c0_i32_0 = arith.constant 0 : i32
    %c0_i32_1 = arith.constant 0 : i32
    return %arg0, %c0_i32, %c0_i32_0 : i32, i32, i32
  }
}

</mosaic_0001>

<bundles_post_ra>
// kernel: _gaussian_filter_impl.1
= control target key start
LH: loop header
LB: loop body
LE: loop exit
PB: predicated region body
PF: predicated region fallthrough
CT: control target
= control target key end

     0   :  { %6 = vsyncpa [#allocation4], 0  ;;  %s593_s0 = inlined_call_operand.hbm [shape: f32[6,16,16], index: 0, kind: input, shape index: {}]   ;;  %s594_s1 = inlined_call_operand.vmem [shape: f32[6,20,20], index: 1, kind: output, shape index: {}]  }
   0x1   :  { %8 = vsyncpa [#allocation4 + $0x1], 0  ;;  %s485_s6 = smov 0   ;;  %s487_s7 = smov 0  }
   0x2   :  { %s489_s8 = smov 0   ;;  %s491_s9 = smov 0  }
   0x3 LB: > { %s504_s10 = sadd.s32 4294967295, %s465_s9   ;;  %s507_s11 = sadd.s32 1, %s465_s9   ;;  %s465_s9 = sphi %s491_s9, %s601_s9   ;;  %s461_s8 = sphi %s489_s8, %s600_s8   ;;  %s457_s7 = sphi %s487_s7, %s599_s7   ;;  %s453_s6 = sphi %s485_s6, %s598_s6  }
   0x4   : > { %s18_s12 = ssub.s32 %s465_s9, %s507_s11  ;;  %s21_s13 = sadd.s32 1, %s461_s8 }
   0x5   : > { %p19_p0 = scmp.eq.s32.totalorder %s18_s12, 0  ;;  %p28_p1 = scmp.ne.s32.totalorder %s461_s8, %s457_s7 }
   0x6   : > { %p29_p2 = scmp.eq.s32.totalorder %s465_s9, 0  ;;  %p34_p3 = scmp.ne.s32.totalorder %s457_s7, %s453_s6 }
   0x7   : > { %s517_s14 = scalar_select %p19_p0, %s461_s8, %s21_s13  }
   0x8   : > { %p30_p4 = por %p29_p2, %p28_p1  ;;  %p35_p5 = scmp.eq.s32.totalorder %s504_s10, 0 }
   0x9   : > { %p361_p6 = scmp.lt.s32.totalorder %s465_s9, 6  ;;  %s84_s16 = sand.u32 1, %s461_s8  }
   0xa   : > { %p521_p7 = por %p35_p5, %p34_p3  ;;  %s345_s17 = sshll.u32 %s84_s16, 4 }
   0xb   : > { %s353_s18 = sshll.u32 %s465_s9, 8  ;;  %s88_s22 = scalar_lea.vmem [#allocation3], %s345_s17 }
   0xc   : > { %s530_s21 = scalar_lea.hbm %s593_s0, %s353_s18  ;;  %s95_s23 = sshll.u32 %s88_s22, 4  ;;  %s532_s23 = int_to_ptr.vmem [resolvable:$true] %s95_s23 }
   0xd   : > { %p534_p8 = pnand %p361_p6, %p30_p4  ;;  %s539_s25 = scalar_lea.sflag [#allocation4], %s84_s16 }
   0xe   : > { %s401_s26 = scalar_lea.hbm %s530_s21, 256  ;;  %s406_s29 = scalar_lea.hbm %s593_s0, 1536 }
   0xf   : > { %p402_p10 = scmp.ne.s32.totalorder %s530_s21, %s401_s26  ;;  %p403_p11 = pneg %p534_p8 }
  0x10   : > { %p407_p0 = scmp.lt.u32.totalorder %s530_s21, %s593_s0  ;;  %p408_p1 = scmp.lt.u32.totalorder %s406_s29, %s401_s26 }
  0x11   : > { %p404_p12 = pnand %p403_p11, %p402_p10  ;;  %p410_p3 = scmp.lt.u32.totalorder %s401_s26, %s530_s21 }
  0x12   : > { %p409_p2 = por %p408_p1, %p407_p0 }
  0x13   : > { %p405_p13 = pneg %p404_p12 }
  0x14   : > { %p411_p4 = por %p410_p3, %p409_p2 }
  0x16   : > { %p412_p5 = pnand %p411_p4, %p405_p13 }
  0x18   : > { %415 = shalt.err (!%p412_p5)
}
  0x19   : > { %s416_s3 = scalar_lea.vmem %s532_s23, 256  ;;  %s467_s4 = smov [#allocation3]  }
  0x1a   : > { %p417_p6 = scmp.ne.s32.totalorder %s532_s23, %s416_s3  ;;  %s421_s5 = sshll.u32 %s467_s4, 4  ;;  %s422_s5 = int_to_ptr.vmem [resolvable:$false] %s421_s5 }
  0x1b   : > { %s423_s6 = scalar_lea.vmem %s422_s5, 512  ;;  %p424_p9 = scmp.lt.s32.totalorder %s532_s23, %s422_s5 }
  0x1c   : > { %p419_p10 = pnand %p417_p6, %p403_p11  ;;  %p425_p0 = scmp.lt.s32.totalorder %s423_s6, %s416_s3 }
  0x1e   : > { %p420_p12 = pneg %p419_p10  ;;  %p426_p1 = por %p425_p0, %p424_p9 }
  0x20   : > { %p427_p2 = pnand %p426_p1, %p420_p12 }
  0x22   : > { %430 = shalt.err (!%p427_p2)
}
  0x23   : > { %s468_s12 = smov 128   ;;  %s469_s13 = smov 8  }
  0x24   : > { %360 = dma.hbm_to_vmem [thread:$0]  (!%p534_p8), %s530_s21, 256, %s532_s23, %s539_s25, %s468_s12, %s468_s12, %s469_s13  }
  0x25   : > { %p103_p11 = scmp.lt.s32.totalorder %s465_s9, 7  ;;  %p597_p13 = scmp.ge.s32.totalorder %s465_s9, 1 }
  0x27   : > { %p104_p3 = pnand %p597_p13, %p103_p11 }
  0x28   : > { %s109_s16 = sand.u32 (!%p104_p3), 1, %s457_s7  }
  0x29   : > { %107 = sbr.rel (%p104_p3) target bundleno = 428 (0x1ac), region = 24  ;;  %s349_s17 = sshll.u32 (!%p104_p3), %s109_s16, 4 }
  0x2a   : > { %s110_s18 = scalar_lea.sflag (!%p104_p3), [#allocation4], %s109_s16  ;;  %s113_s19 = scalar_lea.vmem (!%p104_p3), [#allocation3], %s349_s17 }
  0x30   : > { %448 = dma.done.wait (%p521_p7), %s110_s18, 256  }
  0x31   : > { %450 = vsyncadd (%p521_p7), %s110_s18, 4294967040  ;;  %vm137_vm0 = vcmask 195584   ;;  %vm140_vm1 = vcmask 31744   ;;  %vm143_vm2 = vcmask 195744   ;;  %v470_v0 = vmov 0.0   ;;  %v146_v1 = vld [vmem:[%s113_s19] sm:$0xff] }
  0x32   : > { %138 = vst.msk [vmem:[#allocation2] sm:$0xff] %vm137_vm0, %v470_v0  ;;  %139 = vst.msk [vmem:[#allocation2 + $0x18] sm:$0xff] %vm137_vm0, %v470_v0  ;;  %s471_s9 = smov 4   ;;  %v147_v2 = vld [vmem:[%s113_s19 + $0x8] sm:$0xff]  ;;  %vm156_vm3 = vcmask 162848   ;;  %s472_s15 = smov 126  }
  0x33   : > { %141 = vst.msk [vmem:[#allocation2 + $0x8] sm:$0xff] %vm140_vm1, %v470_v0  ;;  %142 = vst.msk [vmem:[#allocation2 + $0x10] sm:$0xff] %vm140_vm1, %v470_v0  ;;  %150 = vrot.lane.b32.xlu0 %v146_v1, %s471_s9  ;;  %s473_s20 = smov 124   ;;  %s474_s21 = smov 127   ;;  %vm270_vm4 = vcmask 162816   ;;  %vm273_vm5 = vcmask 158720  }
  0x34   : > { %144 = vst.msk [vmem:[#allocation2 + $0x8] sm:$0xff] %vm143_vm2, %v470_v0  ;;  %145 = vst.msk [vmem:[#allocation2 + $0x10] sm:$0xff] %vm143_vm2, %v470_v0  ;;  %p132_p7 = scmp.lt.s32.totalorder %s504_s10, 5 }
  0x36   : > { %s603_s10 = smov (!%p132_p7, %s504_s10), 5 }
  0x37   : > { %152 = vrot.lane.b32.xlu0 %v147_v2, %s471_s9  ;;  %s354_s22 = smul.u32 24, %s603_s10 }
  0x39   : > { %v191_v5 = vld [vmem:[#allocation2 + $0x18] sm:$0xf]  ;;  %s136_s25 = scalar_lea.vmem %s594_s1, %s354_s22 }
  0x3a   : > { %v194_v17 = vmul.f32 0.026913157, %v191_v5 }
  0xa5   : > { %v151_v3 = vpop.permute.xlu0 %150 }
  0xa6   : > { %157 = vst.msk [vmem:[#allocation2 + $0x8] sm:$0xff] %vm156_vm3, %v151_v3 }
  0xa9   : > { %v153_v4 = vpop.permute.xlu0 %152 }
  0xaa   : > { %158 = vst.msk [vmem:[#allocation2 + $0x10] sm:$0xff] %vm156_vm3, %v153_v4 }
  0xad   : > { %v159_v6 = vld [vmem:[#allocation2 + $0x4] sm:$0xff] }
  0xae   : > { %v165_v7 = vld [vmem:[#allocation2 + $0x5] sm:$0xff]  ;;  %v162_v9 = vmul.f32 0.026913157, %v159_v6 }
  0xaf   : > { %v171_v8 = vld [vmem:[#allocation2 + $0x6] sm:$0xff]  ;;  %v168_v10 = vmul.f32 0.23336768, %v165_v7 }
  0xb0   : > { %v174_v11 = vmul.f32 0.4794383, %v171_v8  ;;  %v180_v12 = vld [vmem:[#allocation2 + $0x7] sm:$0xff] }
  0xb1   : > { %v189_v13 = vld [vmem:[#allocation2 + $0x8] sm:$0xff]  ;;  %v183_v15 = vmul.f32 0.23336768, %v180_v12  ;;  %v161_v18 = vld [vmem:[#allocation2 + $0x14] sm:$0xf] }
  0xb2   : > { %v177_v14 = vadd.f32 %v174_v11, %v162_v9  ;;  %v192_v16 = vmul.f32 0.026913157, %v189_v13  ;;  %v167_v19 = vld [vmem:[#allocation2 + $0x15] sm:$0xf]  ;;  %v164_v23 = vmul.f32 0.026913157, %v161_v18 }
  0xb3   : > { %v173_v20 = vld [vmem:[#allocation2 + $0x16] sm:$0xf]  ;;  %v186_v21 = vadd.f32 %v183_v15, %v168_v10  ;;  %v170_v24 = vmul.f32 0.23336768, %v167_v19  ;;  %v160_v28 = vld [vmem:[#allocation2 + $0xc] sm:$0xff] }
  0xb4   : > { %v195_v22 = vadd.f32 %v192_v16, %v177_v14  ;;  %v182_v25 = vld [vmem:[#allocation2 + $0x17] sm:$0xf]  ;;  %v176_v26 = vmul.f32 0.4794383, %v173_v20  ;;  %v166_v29 = vld [vmem:[#allocation2 + $0xd] sm:$0xff] }
  0xb5   : > { %v185_v27 = vmul.f32 0.23336768, %v182_v25  ;;  %v163_v31 = vmul.f32 0.026913157, %v160_v28  ;;  %v169_v32 = vmul.f32 0.23336768, %v166_v29 }
  0xb6   : > { %v198_v30 = vadd.f32 %v195_v22, %v186_v21  ;;  %v172_v33 = vld [vmem:[#allocation2 + $0xe] sm:$0xff]  ;;  %v179_v35 = vadd.f32 %v176_v26, %v164_v23 }
  0xb7   : > { %v181_v34 = vld [vmem:[#allocation2 + $0xf] sm:$0xff]  ;;  %v175_v36 = vmul.f32 0.4794383, %v172_v33  ;;  %v188_v40 = vadd.f32 %v185_v27, %v170_v24 }
  0xb8   : > { %v184_v37 = vmul.f32 0.23336768, %v181_v34  ;;  %v190_v38 = vld [vmem:[#allocation2 + $0x10] sm:$0xff]  ;;  %v204_v39 = vmul.f32 0.23336768, %v198_v30  ;;  %v197_v41 = vadd.f32 %v194_v17, %v179_v35 }
  0xb9   : > { %v178_v42 = vadd.f32 %v175_v36, %v163_v31  ;;  %v193_v43 = vmul.f32 0.026913157, %v190_v38  ;;  %v207_v51 = vmul.f32 0.4794383, %v198_v30  ;;  %v201_v52 = vmul.f32 0.026913157, %v198_v30 }
  0xba   : > { %228 = vrot.lane.b32.xlu1 %v204_v39, %s472_s15  ;;  %v200_v44 = vadd.f32 %v197_v41, %v188_v40  ;;  %v187_v45 = vadd.f32 %v184_v37, %v169_v32 }
  0xbb   : > { %v196_v46 = vadd.f32 %v193_v43, %v178_v42 }
  0xbc   : > { %v206_v47 = vmul.f32 0.23336768, %v200_v44  ;;  %v209_v53 = vmul.f32 0.4794383, %v200_v44  ;;  %v203_v54 = vmul.f32 0.026913157, %v200_v44 }
  0xbd   : > { %v199_v48 = vadd.f32 %v196_v46, %v187_v45 }
  0xbe   : > { %232 = vrot.lane.b32.xlu0 %v206_v47, %s472_s15 }
  0xbf   : > { %v205_v49 = vmul.f32 0.23336768, %v199_v48  ;;  %v208_v50 = vmul.f32 0.4794383, %v199_v48  ;;  %v202_v55 = vmul.f32 0.026913157, %v199_v48 }
  0xc1   : > { %230 = vrot.lane.b32.xlu1 %v205_v49, %s472_s15 }
  0xc2   : > { %215 = vrot.lane.b32.xlu0 %v208_v50, %s472_s15 }
  0xc5   : > { %213 = vrot.lane.b32.xlu1 %v207_v51, %s472_s15 }
  0xc6   : > { %243 = vrot.lane.b32.xlu0 %v201_v52, %s473_s20 }
  0xc9   : > { %217 = vrot.lane.b32.xlu1 %v209_v53, %s472_s15 }
  0xca   : > { %247 = vrot.lane.b32.xlu0 %v203_v54, %s473_s20 }
  0xcd   : > { %245 = vrot.lane.b32.xlu1 %v202_v55, %s473_s20 }
 0x12c   : > { %v229_v56 = vpop.permute.xlu1 %228 }
 0x12d   : > { %v237_v57 = vadd.f32 %v229_v56, %v204_v39 }
 0x12f   : > { %258 = vrot.lane.b32.xlu1 %v237_v57, %s474_s21 }
 0x130   : > { %v233_v58 = vpop.permute.xlu0 %232 }
 0x131   : > { %v239_v59 = vadd.f32 %v233_v58, %v206_v47 }
 0x133   : > { %v231_v60 = vpop.permute.xlu1 %230  ;;  %262 = vrot.lane.b32.xlu1 %v239_v59, %s474_s21 }
 0x134   : > { %v238_v61 = vadd.f32 %v231_v60, %v205_v49  ;;  %v216_v63 = vpop.permute.xlu0 %215 }
 0x135   : > { %v223_v9 = vadd.f32 %v216_v63, %v202_v55 }
 0x136   : > { %260 = vrot.lane.b32.xlu0 %v238_v61, %s474_s21 }
 0x137   : > { %v214_v62 = vpop.permute.xlu1 %213 }
 0x138   : > { %v244_v1 = vpop.permute.xlu0 %243  ;;  %v222_v3 = vadd.f32 %v214_v62, %v201_v52 }
 0x13a   : > { %v252_v4 = vadd.f32 %v244_v1, %v222_v3 }
 0x13b   : > { %v218_v0 = vpop.permute.xlu1 %217 }
 0x13c   : > { %v248_v6 = vpop.permute.xlu0 %247  ;;  %v224_v8 = vadd.f32 %v218_v0, %v203_v54 }
 0x13e   : > { %v254_v10 = vadd.f32 %v248_v6, %v224_v8 }
 0x13f   : > { %v246_v2 = vpop.permute.xlu1 %245 }
 0x140   : > { %v253_v12 = vadd.f32 %v246_v2, %v223_v9 }
 0x1a1   : > { %v259_v5 = vpop.permute.xlu1 %258 }
 0x1a2   : > { %v267_v7 = vadd.f32 %v259_v5, %v252_v4 }
 0x1a4   : > { %271 = vst.msk [vmem:[%s136_s25] sm:$0xff] %vm270_vm4, %v267_v7 }
 0x1a5   : > { %v263_v11 = vpop.permute.xlu1 %262 }
 0x1a6   : > { %v269_v13 = vadd.f32 %v263_v11, %v254_v10 }
 0x1a8   : > { %v261_v14 = vpop.permute.xlu0 %260  ;;  %274 = vst.msk [vmem:[%s136_s25 + $0x10] sm:$0xf] %vm273_vm5, %v269_v13 }
 0x1a9   : > { %v268_v15 = vadd.f32 %v261_v14, %v253_v12 }
 0x1ab   : > { %272 = vst.msk [vmem:[%s136_s25 + $0x8] sm:$0xff] %vm270_vm4, %v268_v15 }
 0x1ac PF: > { %p11_p8 = scmp.ge.s32.totalorder %s507_s11, 8   ;;  %s598_s6 = smov %s457_s7 }
 0x1ad   : > { %s599_s7 = smov %s461_s8  ;;  %s600_s8 = smov %s517_s14 }
 0x1ae   : > { %s601_s9 = smov %s507_s11  ;;  %13 = sbr.rel (!%p11_p8) target bundleno = 3 (0x3), region = 64 }
 0x1b5   :  { %296 = vsyncpa [#allocation4], 1 }
 0x1b6   :  { %298 = vsyncpa [#allocation4 + $0x1], 1 }

</bundles_post_ra>
